<compile_context>
chip_gen: v7x
topology: tpu7x:2x2x1
jax: 0.10.0
libtpu: 0.0.40
codegen_flags: <defaults>
</compile_context>

<pallas_src>
import math

import jax
import jax.numpy as jnp
from jax.experimental import pallas as pl
from jax.experimental.pallas import tpu as pltpu


def _round_up(x, m):
    return ((x + m - 1) // m) * m


def _sublane_pack(dtype):
    # elements packed per 32-bit sublane slot (1 for f32, 2 for bf16, 4 for fp8)
    return max(1, 4 // jnp.dtype(dtype).itemsize)


def _auto_config():
    """Per-generation (tm_max, vmem_limit_bytes, is_v7)."""
    try:
        kind = jax.devices()[0].device_kind.lower()
    except Exception:  # pragma: no cover - defensive
        kind = ""
    if "v7" in kind or "tpu7" in kind:
        # ~3.2 TB/s per TC: big tiles; double-buffered blocks at tm=131072 f32
        # (~33 MiB) exceed the 32 MiB default scoped VMEM, so request more
        # (64 MiB physical).
        return 131072, 48 << 20, True
    if "v6" in kind:
        # ~16 MiB of double-buffered blocks at tm=65536: under the 32 MiB
        # default scoped limit, no compiler_params change needed.
        return 65536, None, False
    # v5e (16 MiB default scoped VMEM) and unknown/older chips: tm=32768 needs
    # ~8 MiB of blocks and already amortizes the grid-step overhead at the
    # lower HBM bandwidth.
    return 32768, None, False


def fcnn_kernel(x_ref, w1t_ref, b1_ref, w2t_ref, b2_ref, o_ref):
    # x_ref  : (F, TM) input tile, batch along lanes (lane-dense)
    # w1t_ref: (W, F)  first-layer weight (VMEM resident)
    # b1_ref : (W, 1)  first-layer bias (broadcast over lanes)
    # w2t_ref: (1, W)  second-layer weight
    # b2_ref : (1,)    second-layer bias, SMEM scalar
    # o_ref  : (1, TM) lane-dense logits tile

    # Hidden layer: (W, F) @ (F, TM) -> (W, TM), f32 accumulation on the MXU.
    h = jnp.dot(w1t_ref[...], x_ref[...], preferred_element_type=jnp.float32)
    h = jnp.maximum(h + b1_ref[...], 0.0)  # bias + ReLU on the VPU

    # Output layer: (1, W) @ (W, TM) -> (1, TM) lane-dense logits.
    out = jnp.dot(w2t_ref[...], h, preferred_element_type=jnp.float32)
    o_ref[...] = out + b2_ref[0]


def fcnn_forward_feature_major(x_t, w1, b1, w2, b2, *, tm_max=None,
                               compute_dtype=jnp.float32,
                               vmem_limit_bytes=None, _relayout_bytes=0):
    """x_t: (F, N) feature-major input (no wrapper relayout).  Returns (N, 1) f32."""
    f, n = x_t.shape
    w = w1.shape[1]

    auto_tm, auto_vmem, is_v7 = _auto_config()
    if tm_max is None:
        tm_max = auto_tm
    if vmem_limit_bytes is None:
        vmem_limit_bytes = auto_vmem
    tm_max = _round_up(max(int(tm_max), 128), 128)

    # Bounded tail padding: split into cdiv(n, tm_max) tiles and round the tile
    # up to a lane multiple, so <128 dead columns per tile.
    num_tiles = max(1, pl.cdiv(n, tm_max))
    tm = _round_up(pl.cdiv(n, num_tiles), 128)
    n_pad = num_tiles * tm

    x_t = x_t.astype(compute_dtype)
    if n_pad != n:
        x_t = jnp.pad(x_t, ((0, 0), (0, n_pad - n)))         # (F, n_pad)
    w1_t = w1.T.astype(compute_dtype)                          # (W, F)
    b1_c = b1.reshape(w, 1).astype(jnp.float32)                # (W, 1)
    w2_t = w2.reshape(1, w).astype(jnp.float32)                # (1, W)
    b2_s = b2.reshape(1).astype(jnp.float32)                   # (1,) SMEM scalar

    # Advisory cost: what the custom call actually moves (padded sublanes on x,
    # padded (1->8) output slab) plus any wrapper relayout pass.
    dsize = jnp.dtype(compute_dtype).itemsize
    f_pad = _round_up(f, 8 * _sublane_pack(compute_dtype))
    bytes_accessed = (
        f_pad * n_pad * dsize            # dominant x stream
        + 8 * n_pad * 4                  # output slab (1 row padded to 8 sublanes)
        + f_pad * w * dsize + (2 * w + 1) * 4   # resident weights / biases
        + int(_relayout_bytes)
    )
    cost = pl.CostEstimate(
        flops=2 * n_pad * f * w + 2 * n_pad * w,
        transcendentals=0,
        bytes_accessed=int(bytes_accessed),
    )

    # Real two-TensorCore split of the batch stream on v7x; plain "parallel"
    # elsewhere (near no-op on 1-TC chips, harmless).
    if is_v7 and num_tiles >= 2:
        dim_sem = (pltpu.CORE_PARALLEL,)
    else:
        dim_sem = ("parallel",)

    out = pl.pallas_call(
        fcnn_kernel,
        out_shape=jax.ShapeDtypeStruct((1, n_pad), jnp.float32),
        grid=(num_tiles,),
        in_specs=[
            pl.BlockSpec((f, tm), lambda i: (0, i)),    # x tile streams over batch
            pl.BlockSpec((w, f), lambda i: (0, 0)),     # W1^T resident
            pl.BlockSpec((w, 1), lambda i: (0, 0)),     # b1 resident
            pl.BlockSpec((1, w), lambda i: (0, 0)),     # W2^T resident
            pl.BlockSpec(memory_space=pltpu.MemorySpace.SMEM),  # b2 scalar
        ],
        out_specs=pl.BlockSpec((1, tm), lambda i: (0, i)),
        compiler_params=pltpu.CompilerParams(
            dimension_semantics=dim_sem,
            vmem_limit_bytes=vmem_limit_bytes,
        ),
        cost_estimate=cost,
    )(x_t, w1_t, b1_c, w2_t, b2_s)

    # Padded columns hold W2·ReLU(b1)+b2 garbage; slicing to :n discards it.
    return out[0, :n].reshape(n, 1)


def fcnn_forward(x, w1, b1, w2, b2, *, tm_max=None, compute_dtype=jnp.float32,
                 vmem_limit_bytes=None):
    """x: (N, F) exactly as the PyTorch module.  Returns (N, 1) f32 logits.

    The kernel wants batch on the lane axis, so this wrapper performs one
    (N, F) -> (F, N) relayout pass before the kernel; its bytes are accounted
    for in the CostEstimate.  Prefer fcnn_forward_feature_major (or producing
    x feature-major upstream) to avoid that extra HBM pass entirely.
    """
    # TODO(synk): fuse this transpose into the upstream producer (emit x as
    # (F, N) under jit) so the kernel streams x with no extra HBM pass.
    n, f = x.shape
    relayout_bytes = 2 * n * f * jnp.dtype(compute_dtype).itemsize
    return fcnn_forward_feature_major(
        x.T, w1, b1, w2, b2, tm_max=tm_max, compute_dtype=compute_dtype,
        vmem_limit_bytes=vmem_limit_bytes, _relayout_bytes=relayout_bytes)


def init_params(key, input_dim=20, width=64):
    """Deterministic init mimicking nn.Linear's U(-1/sqrt(fan_in), 1/sqrt(fan_in))."""
    k1, k2, k3, k4 = jax.random.split(key, 4)
    bound1 = 1.0 / math.sqrt(input_dim)
    bound2 = 1.0 / math.sqrt(width)
    w1 = jax.random.uniform(k1, (input_dim, width), jnp.float32, -bound1, bound1)
    b1 = jax.random.uniform(k2, (1, width), jnp.float32, -bound1, bound1)
    w2 = jax.random.uniform(k3, (width, 1), jnp.float32, -bound2, bound2)
    b2 = jax.random.uniform(k4, (1, 1), jnp.float32, -bound2, bound2)
    return w1, b1, w2, b2


if __name__ == "__main__":
    key = jax.random.PRNGKey(0)
    k_x, k_p = jax.random.split(key)

    batch, input_dim, width = 8, 20, 64
    x = jax.random.normal(k_x, (batch, input_dim), jnp.float32)
    w1, b1, w2, b2 = init_params(k_p, input_dim=input_dim, width=width)

    def ref_fn(xx):
        return jnp.maximum(xx @ w1 + b1, 0.0) @ w2 + b2

    # f32 path, module-native (N, F) input, single tile.
    out = jax.block_until_ready(fcnn_forward(x, w1, b1, w2, b2))
    assert out.shape == (batch, 1)
    assert jnp.allclose(out, ref_fn(x), atol=1e-5, rtol=1e-5)

    # Feature-major entry (no wrapper relayout pass) must match.
    out_fm = jax.block_until_ready(
        fcnn_forward_feature_major(jnp.asarray(x.T), w1, b1, w2, b2))
    assert out_fm.shape == (batch, 1)
    assert jnp.allclose(out_fm, ref_fn(x), atol=1e-5, rtol=1e-5)

    # Multi-tile grid + bounded tail padding (n=300, tm_max=128 -> 3 tiles of 128).
    x2 = jax.random.normal(jax.random.PRNGKey(1), (300, input_dim), jnp.float32)
    out2 = jax.block_until_ready(fcnn_forward(x2, w1, b1, w2, b2, tm_max=128))
    assert out2.shape == (300, 1)
    assert jnp.allclose(out2, ref_fn(x2), atol=1e-5, rtol=1e-5)

    # Ragged n with the auto (large) tile: tail padding stays < 128 columns.
    x3 = jax.random.normal(jax.random.PRNGKey(2), (1000, input_dim), jnp.float32)
    out3 = jax.block_until_ready(fcnn_forward(x3, w1, b1, w2, b2))
    assert out3.shape == (1000, 1)
    assert jnp.allclose(out3, ref_fn(x3), atol=1e-5, rtol=1e-5)

    # bf16 x/W1 fast path (f32 MXU accumulation): ~33% less HBM on the x stream.
    out_bf16 = jax.block_until_ready(
        fcnn_forward(x, w1, b1, w2, b2, compute_dtype=jnp.bfloat16))
    assert jnp.allclose(out_bf16, ref_fn(x), atol=5e-2, rtol=5e-2)

    print("KERNEL_OK")
</pallas_src>

<mosaic_0001>
module attributes {stable_mosaic.version = 11 : i64} {
  func.func @fcnn_kernel(%arg0: i32, %arg1: memref<20x128xf32, #tpu.memory_space<vmem>>, %arg2: memref<64x20xf32, #tpu.memory_space<vmem>>, %arg3: memref<64x1xf32, #tpu.memory_space<vmem>>, %arg4: memref<1x64xf32, #tpu.memory_space<vmem>>, %arg5: memref<1xf32, #tpu.memory_space<smem>>, %arg6: memref<1x128xf32, #tpu.memory_space<vmem>>) attributes {dimension_semantics = [#tpu.dimension_semantics<parallel>], iteration_bounds = array<i64: 1>, scalar_prefetch = 0 : i64, scratch_operands = 0 : i64, tpu.core_type = #tpu.core_type<tc>, window_params = [{transform_indices = @transform_0, window_bounds = array<i64: 20, 128>}, {pipeline_mode = #tpu.pipeline_mode<synchronous>, transform_indices = @transform_1, window_bounds = array<i64: 64, 20>}, {pipeline_mode = #tpu.pipeline_mode<synchronous>, transform_indices = @transform_2, window_bounds = array<i64: 64, 1>}, {pipeline_mode = #tpu.pipeline_mode<synchronous>, transform_indices = @transform_3, window_bounds = array<i64: 1, 64>}, {transform_indices = @transform_4, window_bounds = array<i64: 1>}, {transform_indices = @transform_5, window_bounds = array<i64: 1, 128>}]} {
    %c0 = arith.constant 0 : index
    %c0_0 = arith.constant 0 : index
    %0 = vector.load %arg2[%c0, %c0_0] : memref<64x20xf32, #tpu.memory_space<vmem>>, vector<64x20xf32>
    %c0_1 = arith.constant 0 : index
    %c0_2 = arith.constant 0 : index
    %1 = vector.load %arg1[%c0_1, %c0_2] : memref<20x128xf32, #tpu.memory_space<vmem>>, vector<20x128xf32>
    %cst = arith.constant dense<0.000000e+00> : vector<64x128xf32>
    %2 = tpu.matmul %0, %1, %cst {dimension_numbers = #tpu.dot_dimension_numbers<[1], [0], [0], [1], [0, 0, 1, 1], [], []>} : vector<64x20xf32>, vector<20x128xf32>, vector<64x128xf32> -> vector<64x128xf32>
    %c0_3 = arith.constant 0 : index
    %c0_4 = arith.constant 0 : index
    %3 = vector.load %arg3[%c0_3, %c0_4] : memref<64x1xf32, #tpu.memory_space<vmem>>, vector<64x1xf32>
    %4 = vector.broadcast %3 : vector<64x1xf32> to vector<64x128xf32>
    %5 = arith.addf %2, %4 : vector<64x128xf32>
    %cst_5 = arith.constant 0.000000e+00 : f32
    %6 = vector.broadcast %cst_5 : f32 to vector<64x128xf32>
    %7 = arith.maximumf %5, %6 : vector<64x128xf32>
    %c0_6 = arith.constant 0 : index
    %c0_7 = arith.constant 0 : index
    %8 = vector.load %arg4[%c0_6, %c0_7] : memref<1x64xf32, #tpu.memory_space<vmem>>, vector<1x64xf32>
    %cst_8 = arith.constant dense<0.000000e+00> : vector<1x128xf32>
    %9 = tpu.matmul %8, %7, %cst_8 {dimension_numbers = #tpu.dot_dimension_numbers<[1], [0], [0], [1], [0, 0, 1, 1], [], []>} : vector<1x64xf32>, vector<64x128xf32>, vector<1x128xf32> -> vector<1x128xf32>
    %c0_9 = arith.constant 0 : index
    %10 = memref.load %arg5[%c0_9] : memref<1xf32, #tpu.memory_space<smem>>
    %11 = vector.broadcast %10 : f32 to vector<1x128xf32>
    %12 = arith.addf %9, %11 : vector<1x128xf32>
    %c0_10 = arith.constant 0 : index
    %c0_11 = arith.constant 0 : index
    %13 = vector.load %arg6[%c0_10, %c0_11] : memref<1x128xf32, #tpu.memory_space<vmem>>, vector<1x128xf32>
    tpu.vector_store %arg6[%c0_10, %c0_11], %12 {strides = array<i32>} : memref<1x128xf32, #tpu.memory_space<vmem>>, vector<1x128xf32>,
    return
  }
  func.func @transform_0(%arg0: i32) -> (i32, i32) {
    %c0_i32 = arith.constant 0 : i32
    %c0_i32_0 = arith.constant 0 : i32
    return %c0_i32, %arg0 : i32, i32
  }
  func.func @transform_1(%arg0: i32) -> (i32, i32) {
    %c0_i32 = arith.constant 0 : i32
    %c0_i32_0 = arith.constant 0 : i32
    %c0_i32_1 = arith.constant 0 : i32
    return %c0_i32, %c0_i32_0 : i32, i32
  }
  func.func @transform_2(%arg0: i32) -> (i32, i32) {
    %c0_i32 = arith.constant 0 : i32
    %c0_i32_0 = arith.constant 0 : i32
    %c0_i32_1 = arith.constant 0 : i32
    return %c0_i32, %c0_i32_0 : i32, i32
  }
  func.func @transform_3(%arg0: i32) -> (i32, i32) {
    %c0_i32 = arith.constant 0 : i32
    %c0_i32_0 = arith.constant 0 : i32
    %c0_i32_1 = arith.constant 0 : i32
    return %c0_i32, %c0_i32_0 : i32, i32
  }
  func.func @transform_4(%arg0: i32) -> i32 {
    %c0_i32 = arith.constant 0 : i32
    %c0_i32_0 = arith.constant 0 : i32
    return %c0_i32 : i32
  }
  func.func @transform_5(%arg0: i32) -> (i32, i32) {
    %c0_i32 = arith.constant 0 : i32
    %c0_i32_0 = arith.constant 0 : i32
    return %c0_i32, %arg0 : i32, i32
  }
}

</mosaic_0001>

<bundles_post_ra>
// kernel: tpu_custom_call.1
= control target key start
LH: loop header
LB: loop body
LE: loop exit
PB: predicated region body
PF: predicated region fallthrough
CT: control target
= control target key end

     0   :  { %vm81_vm0 = vcmask 162816   ;;  %vm106_vm1 = vcmask 1043456   ;;  %v429_v5 = vmov 0   ;;  %s549_s0 = inlined_call_operand.vmem [shape: f32[20,128], index: 0, kind: input, shape index: {}]   ;;  %s550_s1 = inlined_call_operand.vmem [shape: f32[64,20], index: 1, kind: input, shape index: {}]   ;;  %s551_s2 = inlined_call_operand.vmem [shape: f32[64,1], index: 2, kind: input, shape index: {}]   ;;  %s552_s3 = inlined_call_operand.vmem [shape: f32[1,64], index: 3, kind: input, shape index: {}]   ;;  %s553_s4 = inlined_call_operand.<no memory space> [shape: f32[1], index: 4, kind: input, shape index: {}]   ;;  %s554_s5 = inlined_call_operand.hbm [shape: f32[1,128], index: 5, kind: output, shape index: {}]  }
   0x1   :  { %v30_v0 = vld [vmem:[%s549_s0] sm:$0xff]  ;;  %v31_v1 = vld [vmem:[%s549_s0 + $0x8] sm:$0xff]  ;;  %v32_v4 = vld [vmem:[%s549_s0 + $0x10] sm:$0xf]  ;;  %403 = vset.pattern.permute.xlu0 %v429_v5  ;;  %404 = vset.pattern.permute.xlu1 %v429_v5 }
   0x2   :  { %v382_v2 = vpack.c.bf16 %v31_v1, %v30_v0  ;;  %v22_v3 = vld [vmem:[%s550_s1] sm:$0xff]  ;;  %v35_v7 = vld [vmem:[%s551_s2 + $0x10] sm:$0xff]  ;;  %v34_v8 = vld [vmem:[%s551_s2 + $0x8] sm:$0xff] }
   0x3   :  { %351 = vmatprep.mubr.msk.f32.mxu0 %vm81_vm0, %v22_v3  ;;  %v33_v6 = vld [vmem:[%s551_s2] sm:$0xff]  ;;  %53 = vperm.xlu1 %404, %v35_v7   ;;  %v23_v9 = vld [vmem:[%s550_s1 + $0x8] sm:$0xff]  ;;  %v36_v10 = vld [vmem:[%s551_s2 + $0x18] sm:$0xff] }
   0x4   :  { %383 = vmatprep.subr.bf16.mxu0 %v382_v2  ;;  %43 = vperm.xlu0 %403, %v33_v6  }
   0x5   :  { %385 = vmatpush3.bf16.msra.mxu0 %v382_v2 }
   0x6   :  { %349 = vmatprep.subr.msk.mxu0 %vm106_vm1, %v32_v4 }
   0x7   :  { %11 = vsyncpa [#allocation4], 0  ;;  %v24_v11 = vld [vmem:[%s550_s1 + $0x10] sm:$0xff]  ;;  %58 = vperm.xlu1 %404, %v36_v10   ;;  %v37_v12 = vld [vmem:[%s551_s2 + $0x20] sm:$0xff]  ;;  %v430_v21 = vmov 0.0|0.0   ;;  %vm431_vm2 = vmmov 0   ;;  %v225_v60 = vstv %s553_s4 }
   0x8   :  { %48 = vperm.xlu0 %403, %v34_v8   ;;  %v25_v13 = vld [vmem:[%s550_s1 + $0x18] sm:$0xff]  ;;  %v38_v14 = vld [vmem:[%s551_s2 + $0x28] sm:$0xff]  ;;  %v26_v15 = vld [vmem:[%s550_s1 + $0x20] sm:$0xff]  ;;  %386 = vmatprep.subr.bf16.mxu1 %v430_v21  ;;  %v432_v22 = vmov 0.0   ;;  %vm226_vm3 = vcmask 523264   ;;  %s433_s6 = smov [#allocation3]  }
   0x9   :  { %350 = vmatpush3.msk.msra.mxu0 %vm106_vm1, %v32_v4  ;;  %v39_v16 = vld [vmem:[%s551_s2 + $0x30] sm:$0xff]  ;;  %v27_v17 = vld [vmem:[%s550_s1 + $0x28] sm:$0xff]  ;;  %v40_v18 = vld [vmem:[%s551_s2 + $0x38] sm:$0xff]  ;;  %379 = vmatprep.mubr.msk.f32.mxu1 %vm431_vm2, %v432_v22  ;;  %s307_s7 = sshll.u32 %s433_s6, 4  ;;  %s308_s7 = int_to_ptr.vmem [resolvable:$true] %s307_s7 }
   0xa   :  { %352 = vmatmul.mubr.msk.f32.vlgmr.msra.gmra.mrb[0].mxu0 %vm81_vm0, %v23_v9  ;;  %v28_v19 = vld [vmem:[%s550_s1 + $0x30] sm:$0xff]  ;;  %v29_v20 = vld [vmem:[%s550_s1 + $0x38] sm:$0xff]  ;;  %v223_v59 = vld [vmem:[%s552_s3] sm:$0x1]  ;;  %s405_s8 = scalar_lea.vmem %s308_s7, 16  ;;  %s409_s9 = scalar_lea.vmem %s308_s7, 32 }
   0xb   :  { %354 = vmatprep.mubr.msk.f32.mxu0 %vm81_vm0, %v24_v11  ;;  %68 = vperm.xlu1 %404, %v38_v14   ;;  %p406_p0 = scmp.ne.s32.totalorder %s308_s7, %s405_s8  ;;  %p410_p1 = scmp.lt.s32.totalorder %s308_s7, %s308_s7 }
   0xc   :  { %63 = vperm.xlu0 %403, %v37_v12   ;;  %p411_p2 = scmp.lt.s32.totalorder %s409_s9, %s405_s8 }
   0xe   :  { %355 = vmatmul.mubr.msk.f32.gmra.mrb[2].mxu0 %vm81_vm0, %v25_v13  ;;  %p412_p3 = por %p411_p2, %p410_p1 }
   0xf   :  { %357 = vmatprep.mubr.msk.f32.mxu0 %vm81_vm0, %v26_v15  ;;  %78 = vperm.xlu1 %404, %v40_v18  }
  0x10   :  { %73 = vperm.xlu0 %403, %v39_v16   ;;  %p413_p4 = pnand %p412_p3, %p406_p0 }
  0x12   :  { %358 = vmatmul.mubr.msk.f32.gmra.mrb[4].mxu0 %vm81_vm0, %v27_v17 }
  0x13   :  { %360 = vmatprep.mubr.msk.f32.mxu0 %vm81_vm0, %v28_v19 }
  0x16   :  { %361 = vmatmul.mubr.msk.f32.gmra.mrb[6].mxu0 %vm81_vm0, %v29_v20 }
  0x82   :  { %v54_v24 = vpop.permute.xlu1 %53 }
  0x83   :  { %v44_v23 = vpop.permute.xlu0 %43 }
  0x86   :  { %v59_v26 = vpop.permute.xlu1 %58 }
  0x87   :  { %v49_v25 = vpop.permute.xlu0 %48 }
  0x8a   :  { %v69_v36 = vpop.permute.xlu1 %68 }
  0x8b   :  { %v64_v39 = vpop.permute.xlu0 %63 }
  0x8e   :  { %v79_v48 = vpop.permute.xlu1 %78 }
  0x8f   :  { %v74_v51 = vpop.permute.xlu0 %73 }
  0xdd   :  { %v353_v27 = vpop.f32.mrb[0].mxu0 }
  0xde   :  { %v182_v28 = vadd.f32 %v353_v27, %v49_v25  ;;  %v176_v29 = vpop.f32.mrb[1].mxu0 }
  0xdf   :  { %v177_v30 = vadd.f32 %v176_v29, %v44_v23 }
  0xe0   :  { %v216_v31 = vmax.f32 %v182_v28, 0.0 }
  0xe1   :  { %v215_v32 = vmax.f32 %v177_v30, 0.0  ;;  %v356_v33 = vpop.f32.mrb[2].mxu0 }
  0xe2   :  { %v192_v34 = vadd.f32 %v356_v33, %v59_v26  ;;  %v186_v35 = vpop.f32.mrb[3].mxu0 }
  0xe3   :  { %v187_v37 = vadd.f32 %v186_v35, %v54_v24  ;;  %v387_v38 = vpack.c.bf16 %v216_v31, %v215_v32 }
  0xe4   :  { %v218_v40 = vmax.f32 %v192_v34, 0.0 }
  0xe5   :  { %v217_v41 = vmax.f32 %v187_v37, 0.0  ;;  %v359_v42 = vpop.f32.mrb[4].mxu0  ;;  %388 = vmatpush3.bf16.msra.mxu1 %v387_v38 }
  0xe6   :  { %v202_v43 = vadd.f32 %v359_v42, %v69_v36  ;;  %v196_v44 = vpop.f32.mrb[5].mxu0  ;;  %389 = vmatprep.subr.bf16.mxu1 %v430_v21 }
  0xe7   :  { %v390_v45 = vpack.c.bf16 %v218_v40, %v217_v41  ;;  %v197_v46 = vadd.f32 %v196_v44, %v64_v39 }
  0xe8   :  { %v220_v47 = vmax.f32 %v202_v43, 0.0 }
  0xe9   :  { %v219_v49 = vmax.f32 %v197_v46, 0.0  ;;  %v362_v50 = vpop.f32.mrb[6].mxu0  ;;  %391 = vmatpush3.bf16.msra.mxu1 %v390_v45 }
  0xea   :  { %v212_v52 = vadd.f32 %v362_v50, %v79_v48  ;;  %v206_v53 = vpop.f32.mrb[7].mxu0  ;;  %392 = vmatprep.subr.bf16.mxu1 %v430_v21 }
  0xeb   :  { %v393_v54 = vpack.c.bf16 %v220_v47, %v219_v49  ;;  %v207_v55 = vadd.f32 %v206_v53, %v74_v51 }
  0xec   :  { %v222_v56 = vmax.f32 %v212_v52, 0.0 }
  0xed   :  { %v221_v57 = vmax.f32 %v207_v55, 0.0  ;;  %394 = vmatpush3.bf16.msra.mxu1 %v393_v54 }
  0xee   :  { %395 = vmatprep.subr.bf16.mxu1 %v430_v21 }
  0xef   :  { %v396_v58 = vpack.c.bf16 %v222_v56, %v221_v57 }
  0xf1   :  { %397 = vmatpush3.bf16.msra.mxu1 %v396_v58 }
  0xf4   :  { %380 = vmatmul.mubr.msk.f32.vlgmr.msra.gmra.mrb[0].mxu1 %vm226_vm3, %v223_v59 }
 0x1c7   :  { %v296_v61 = vpop.f32.mrb[0].mxu1 }
 0x1c8   :  { %v297_v62 = vadd.f32 %v296_v61, %v225_v60  ;;  %v381_v63 = vpop.f32.mrb[1].mxu1 }
 0x1ca   :  { %300 = vst [vmem:[#allocation3] sm:$0x1] %v297_v62 }
 0x1cb   :  { %416 = shalt.err (!%p413_p4)
}
 0x1cc   :  { %s417_s11 = scalar_lea.hbm %s554_s5, 16 }
 0x1cd   :  { %p418_p5 = scmp.ne.s32.totalorder %s554_s5, %s417_s11  ;;  %p421_p6 = scmp.lt.u32.totalorder %s417_s11, %s554_s5 }
 0x1cf   :  { %p423_p7 = pnand %p421_p6, %p418_p5 }
 0x1d1   :  { %426 = shalt.err (!%p423_p7)
}
 0x1d2   :  { %310 = dma.vmem_to_hbm [thread:$0]  %s308_s7, 16, %s554_s5, [#allocation4]  }
 0x1d3   :  { %427 = dma.done.wait [#allocation4], 16  }
 0x1d4   :  { %428 = vsyncadd [#allocation4], 4294967280 }
 0x1d5   :  { %314 = vsyncpa [#allocation4], 1 }

</bundles_post_ra>
